<compile_context>
chip_gen: v7x
topology: tpu7x:2x2x1
jax: 0.10.0
libtpu: 0.0.40
codegen_flags: <defaults>
</compile_context>

<pallas_src>
import math

import jax
import jax.numpy as jnp
from jax.experimental import pallas as pl
from jax.experimental.pallas import tpu as pltpu

# Below this many bytes the pallas_call is pure launch overhead — skip it.
_MIN_KERNEL_BYTES = 1 << 20  # 1 MiB
# Number of chunked HBM->HBM DMAs to issue (overlap across DMA channels).
_MAX_DMA_CHUNKS = 8


def _min_sublane_rows(itemsize):
    # native sublane tile: 8 rows for 4-byte, 16 for 2-byte, 32 for 1-byte dtypes
    return max(8, 32 // max(1, itemsize))


def _pick_lane_width(total, itemsize, max_chunks):
    """Lane-dense width L (multiple of 128, <= 8192) dividing `total`.

    Prefers the widest L that still leaves M = total // L large enough for
    `max_chunks` sublane-aligned row chunks (so the DMAs can be spread),
    i.e. co-selects (L, M) instead of greedily maximizing L alone.
    Returns None if total is not 128-aligned (caller falls back to reshape).
    """
    if total % 128 != 0:
        return None
    min_rows = _min_sublane_rows(itemsize)
    candidates = [128 * k for k in (64, 32, 16, 8, 4, 2, 1) if total % (128 * k) == 0]
    for lane_w in candidates:
        if total // lane_w >= max_chunks * min_rows:
            return lane_w
    return candidates[0]


def _chunk_bounds(num_rows, num_chunks, min_rows):
    """Static, sublane-aligned chunk boundaries along the row dimension."""
    base = pl.cdiv(num_rows, num_chunks)
    step = ((base + min_rows - 1) // min_rows) * min_rows
    bounds = [min(i * step, num_rows) for i in range(num_chunks + 1)]
    bounds[-1] = num_rows
    return bounds


def _make_hbm_copy_kernel(bounds):
    """Kernel that copies an (M, L) HBM slab to an HBM output via chunked DMA."""
    spans = [(lo, hi - lo) for lo, hi in zip(bounds[:-1], bounds[1:]) if hi > lo]

    def kernel(x_hbm, o_hbm, sems):
        # Issue every chunked HBM->HBM DMA on its own semaphore ...
        for k, (lo, sz) in enumerate(spans):
            pltpu.make_async_copy(
                x_hbm.at[pl.ds(lo, sz)], o_hbm.at[pl.ds(lo, sz)], sems.at[k]
            ).start()
        # ... then drain them all before the kernel returns.
        for k, (lo, sz) in enumerate(spans):
            pltpu.make_async_copy(
                x_hbm.at[pl.ds(lo, sz)], o_hbm.at[pl.ds(lo, sz)], sems.at[k]
            ).wait()

    return kernel, len(spans)


def _pallas_hbm_copy(flat2d, *, max_chunks=_MAX_DMA_CHUNKS):
    """Copy a lane-dense (M, L) slab HBM->HBM with chunked async DMA."""
    num_rows, lane_w = flat2d.shape
    itemsize = jnp.dtype(flat2d.dtype).itemsize
    min_rows = _min_sublane_rows(itemsize)

    if num_rows >= min_rows:
        num_chunks = max(1, min(max_chunks, num_rows // min_rows))
    else:
        num_chunks = 1
    bounds = _chunk_bounds(num_rows, num_chunks, min_rows)
    kernel, n_sems = _make_hbm_copy_kernel(bounds)

    return pl.pallas_call(
        kernel,
        out_shape=jax.ShapeDtypeStruct((num_rows, lane_w), flat2d.dtype),
        in_specs=[pl.BlockSpec(memory_space=pl.ANY)],   # raw HBM ref, no VMEM staging
        out_specs=pl.BlockSpec(memory_space=pl.ANY),    # raw HBM ref, filled by DMA
        scratch_shapes=[pltpu.SemaphoreType.DMA((n_sems,))],
        cost_estimate=pl.CostEstimate(
            flops=0,
            transcendentals=0,
            bytes_accessed=2 * num_rows * lane_w * itemsize,
        ),
    )(flat2d)


def view_forward(x, dim, shape, *, use_pallas_copy=False, donate=False):
    """Pallas/JAX equivalent of View(dim, shape).forward(x).

    Default path is metadata-only (jnp.reshape) — the correct, zero-cost
    implementation of a contiguous .view().  Set use_pallas_copy=True to
    route the contiguous buffer through the chunked HBM->HBM DMA copy kernel
    (benchmarking only).
    """
    in_shape = list(x.shape)
    ndim = len(in_shape)
    d = dim + ndim if dim < 0 else dim  # PyTorch accepts negative dims
    new_shape = in_shape[:d] + list(shape) + in_shape[d + 1:]
    assert math.prod(shape) == in_shape[d], "View shape does not match dimension size"

    if not use_pallas_copy or donate:
        # TODO(synk): reshape is metadata-only; there is no arithmetic to put in a kernel.
        # donate=True would alias in/out and rewrite the exact same HBM bytes —
        # pure wasted bandwidth for a View — so it short-circuits here too.
        return jnp.reshape(x, new_shape)

    total = x.size
    itemsize = jnp.dtype(x.dtype).itemsize
    if total * itemsize < _MIN_KERNEL_BYTES:
        return jnp.reshape(x, new_shape)

    lane_w = _pick_lane_width(total, itemsize, _MAX_DMA_CHUNKS)
    if lane_w is None:
        # ragged last dim: DMA-chunked layout would need masked tails — not worth it
        return jnp.reshape(x, new_shape)

    flat = x.reshape(total // lane_w, lane_w)
    copied = _pallas_hbm_copy(flat)
    return copied.reshape(new_shape)


if __name__ == "__main__":
    key = jax.random.PRNGKey(0)
    k1, k2 = jax.random.split(key)

    # 1) Module-consistent small NCHW input: View(dim=1, shape=(2, 2))
    #    (2, 4, 16, 16) -> (2, 2, 2, 16, 16).  Metadata-only fast path.
    x = jax.random.normal(k1, (2, 4, 16, 16), dtype=jnp.float32)
    out = view_forward(x, 1, (2, 2))
    out = jax.block_until_ready(out)
    ref = jnp.reshape(x, (2, 2, 2, 16, 16))
    assert out.shape == (2, 2, 2, 16, 16)
    assert out.dtype == x.dtype
    assert bool(jnp.array_equal(out, ref))

    # Negative-dim handling (PyTorch-legal): View(dim=-3, shape=(2, 2)).
    out_neg = view_forward(x, -3, (2, 2))
    assert out_neg.shape == (2, 2, 2, 16, 16)
    assert bool(jnp.array_equal(out_neg, ref))

    # 2) Exercise the chunked HBM->HBM DMA copy kernel on a slab large enough
    #    (2 MiB) that the kernel path is taken, and verify it is bit-exact.
    #    View(dim=1, shape=(4, 4)): (4, 16, 64, 128) -> (4, 4, 4, 64, 128).
    x2 = jax.random.normal(k2, (4, 16, 64, 128), dtype=jnp.float32)
    out2 = view_forward(x2, 1, (4, 4), use_pallas_copy=True)
    out2 = jax.block_until_ready(out2)
    ref2 = jnp.reshape(x2, (4, 4, 4, 64, 128))
    assert out2.shape == (4, 4, 4, 64, 128)
    assert out2.dtype == x2.dtype
    assert bool(jnp.array_equal(out2, ref2))

    # donate=True short-circuits to the metadata reshape (no wasted traffic).
    out3 = view_forward(x2, 1, (4, 4), use_pallas_copy=True, donate=True)
    out3 = jax.block_until_ready(out3)
    assert bool(jnp.array_equal(out3, ref2))

    print("KERNEL_OK")
</pallas_src>

<mosaic_0001>
module attributes {stable_mosaic.version = 11 : i64} {
  func.func @kernel(%arg0: memref<64x8192xf32, #tpu.memory_space<any>>, %arg1: memref<64x8192xf32, #tpu.memory_space<any>>, %arg2: memref<8x!tpu.dma_semaphore, #tpu.memory_space<semaphore_mem>>) attributes {dimension_semantics = [], scalar_prefetch = 0 : i64, scratch_operands = 1 : i64, tpu.core_type = #tpu.core_type<tc>} {
    %c0_i32 = arith.constant 0 : i32
    %c0_i32_0 = arith.constant 0 : i32
    %c0_i32_1 = arith.constant 0 : i32
    %0 = tpu.memref_slice %arg0[%c0_i32_0, %c0_i32_1] : memref<64x8192xf32, #tpu.memory_space<any>> -> memref<8x8192xf32, #tpu.memory_space<any>>
    %c0_i32_2 = arith.constant 0 : i32
    %c0_i32_3 = arith.constant 0 : i32
    %1 = tpu.memref_slice %arg1[%c0_i32_2, %c0_i32_3] : memref<64x8192xf32, #tpu.memory_space<any>> -> memref<8x8192xf32, #tpu.memory_space<any>>
    %2 = tpu.memref_slice %arg2[%c0_i32] : memref<8x!tpu.dma_semaphore, #tpu.memory_space<semaphore_mem>> -> memref<1x!tpu.dma_semaphore, #tpu.memory_space<semaphore_mem>>
    %3 = tpu.memref_squeeze %2 : memref<1x!tpu.dma_semaphore, #tpu.memory_space<semaphore_mem>> -> memref<!tpu.dma_semaphore, #tpu.memory_space<semaphore_mem>>
    tpu.enqueue_dma source(%0 : memref<8x8192xf32, #tpu.memory_space<any>>) target(%1 : memref<8x8192xf32, #tpu.memory_space<any>>) target_semaphore(%3 : memref<!tpu.dma_semaphore, #tpu.memory_space<semaphore_mem>>)
    %c1_i32 = arith.constant 1 : i32
    %c8_i32 = arith.constant 8 : i32
    %c0_i32_4 = arith.constant 0 : i32
    %4 = tpu.memref_slice %arg0[%c8_i32, %c0_i32_4] : memref<64x8192xf32, #tpu.memory_space<any>> -> memref<8x8192xf32, #tpu.memory_space<any>>
    %c8_i32_5 = arith.constant 8 : i32
    %c0_i32_6 = arith.constant 0 : i32
    %5 = tpu.memref_slice %arg1[%c8_i32_5, %c0_i32_6] : memref<64x8192xf32, #tpu.memory_space<any>> -> memref<8x8192xf32, #tpu.memory_space<any>>
    %6 = tpu.memref_slice %arg2[%c1_i32] : memref<8x!tpu.dma_semaphore, #tpu.memory_space<semaphore_mem>> -> memref<1x!tpu.dma_semaphore, #tpu.memory_space<semaphore_mem>>
    %7 = tpu.memref_squeeze %6 : memref<1x!tpu.dma_semaphore, #tpu.memory_space<semaphore_mem>> -> memref<!tpu.dma_semaphore, #tpu.memory_space<semaphore_mem>>
    tpu.enqueue_dma source(%4 : memref<8x8192xf32, #tpu.memory_space<any>>) target(%5 : memref<8x8192xf32, #tpu.memory_space<any>>) target_semaphore(%7 : memref<!tpu.dma_semaphore, #tpu.memory_space<semaphore_mem>>)
    %c2_i32 = arith.constant 2 : i32
    %c16_i32 = arith.constant 16 : i32
    %c0_i32_7 = arith.constant 0 : i32
    %8 = tpu.memref_slice %arg0[%c16_i32, %c0_i32_7] : memref<64x8192xf32, #tpu.memory_space<any>> -> memref<8x8192xf32, #tpu.memory_space<any>>
    %c16_i32_8 = arith.constant 16 : i32
    %c0_i32_9 = arith.constant 0 : i32
    %9 = tpu.memref_slice %arg1[%c16_i32_8, %c0_i32_9] : memref<64x8192xf32, #tpu.memory_space<any>> -> memref<8x8192xf32, #tpu.memory_space<any>>
    %10 = tpu.memref_slice %arg2[%c2_i32] : memref<8x!tpu.dma_semaphore, #tpu.memory_space<semaphore_mem>> -> memref<1x!tpu.dma_semaphore, #tpu.memory_space<semaphore_mem>>
    %11 = tpu.memref_squeeze %10 : memref<1x!tpu.dma_semaphore, #tpu.memory_space<semaphore_mem>> -> memref<!tpu.dma_semaphore, #tpu.memory_space<semaphore_mem>>
    tpu.enqueue_dma source(%8 : memref<8x8192xf32, #tpu.memory_space<any>>) target(%9 : memref<8x8192xf32, #tpu.memory_space<any>>) target_semaphore(%11 : memref<!tpu.dma_semaphore, #tpu.memory_space<semaphore_mem>>)
    %c3_i32 = arith.constant 3 : i32
    %c24_i32 = arith.constant 24 : i32
    %c0_i32_10 = arith.constant 0 : i32
    %12 = tpu.memref_slice %arg0[%c24_i32, %c0_i32_10] : memref<64x8192xf32, #tpu.memory_space<any>> -> memref<8x8192xf32, #tpu.memory_space<any>>
    %c24_i32_11 = arith.constant 24 : i32
    %c0_i32_12 = arith.constant 0 : i32
    %13 = tpu.memref_slice %arg1[%c24_i32_11, %c0_i32_12] : memref<64x8192xf32, #tpu.memory_space<any>> -> memref<8x8192xf32, #tpu.memory_space<any>>
    %14 = tpu.memref_slice %arg2[%c3_i32] : memref<8x!tpu.dma_semaphore, #tpu.memory_space<semaphore_mem>> -> memref<1x!tpu.dma_semaphore, #tpu.memory_space<semaphore_mem>>
    %15 = tpu.memref_squeeze %14 : memref<1x!tpu.dma_semaphore, #tpu.memory_space<semaphore_mem>> -> memref<!tpu.dma_semaphore, #tpu.memory_space<semaphore_mem>>
    tpu.enqueue_dma source(%12 : memref<8x8192xf32, #tpu.memory_space<any>>) target(%13 : memref<8x8192xf32, #tpu.memory_space<any>>) target_semaphore(%15 : memref<!tpu.dma_semaphore, #tpu.memory_space<semaphore_mem>>)
    %c4_i32 = arith.constant 4 : i32
    %c32_i32 = arith.constant 32 : i32
    %c0_i32_13 = arith.constant 0 : i32
    %16 = tpu.memref_slice %arg0[%c32_i32, %c0_i32_13] : memref<64x8192xf32, #tpu.memory_space<any>> -> memref<8x8192xf32, #tpu.memory_space<any>>
    %c32_i32_14 = arith.constant 32 : i32
    %c0_i32_15 = arith.constant 0 : i32
    %17 = tpu.memref_slice %arg1[%c32_i32_14, %c0_i32_15] : memref<64x8192xf32, #tpu.memory_space<any>> -> memref<8x8192xf32, #tpu.memory_space<any>>
    %18 = tpu.memref_slice %arg2[%c4_i32] : memref<8x!tpu.dma_semaphore, #tpu.memory_space<semaphore_mem>> -> memref<1x!tpu.dma_semaphore, #tpu.memory_space<semaphore_mem>>
    %19 = tpu.memref_squeeze %18 : memref<1x!tpu.dma_semaphore, #tpu.memory_space<semaphore_mem>> -> memref<!tpu.dma_semaphore, #tpu.memory_space<semaphore_mem>>
    tpu.enqueue_dma source(%16 : memref<8x8192xf32, #tpu.memory_space<any>>) target(%17 : memref<8x8192xf32, #tpu.memory_space<any>>) target_semaphore(%19 : memref<!tpu.dma_semaphore, #tpu.memory_space<semaphore_mem>>)
    %c5_i32 = arith.constant 5 : i32
    %c40_i32 = arith.constant 40 : i32
    %c0_i32_16 = arith.constant 0 : i32
    %20 = tpu.memref_slice %arg0[%c40_i32, %c0_i32_16] : memref<64x8192xf32, #tpu.memory_space<any>> -> memref<8x8192xf32, #tpu.memory_space<any>>
    %c40_i32_17 = arith.constant 40 : i32
    %c0_i32_18 = arith.constant 0 : i32
    %21 = tpu.memref_slice %arg1[%c40_i32_17, %c0_i32_18] : memref<64x8192xf32, #tpu.memory_space<any>> -> memref<8x8192xf32, #tpu.memory_space<any>>
    %22 = tpu.memref_slice %arg2[%c5_i32] : memref<8x!tpu.dma_semaphore, #tpu.memory_space<semaphore_mem>> -> memref<1x!tpu.dma_semaphore, #tpu.memory_space<semaphore_mem>>
    %23 = tpu.memref_squeeze %22 : memref<1x!tpu.dma_semaphore, #tpu.memory_space<semaphore_mem>> -> memref<!tpu.dma_semaphore, #tpu.memory_space<semaphore_mem>>
    tpu.enqueue_dma source(%20 : memref<8x8192xf32, #tpu.memory_space<any>>) target(%21 : memref<8x8192xf32, #tpu.memory_space<any>>) target_semaphore(%23 : memref<!tpu.dma_semaphore, #tpu.memory_space<semaphore_mem>>)
    %c6_i32 = arith.constant 6 : i32
    %c48_i32 = arith.constant 48 : i32
    %c0_i32_19 = arith.constant 0 : i32
    %24 = tpu.memref_slice %arg0[%c48_i32, %c0_i32_19] : memref<64x8192xf32, #tpu.memory_space<any>> -> memref<8x8192xf32, #tpu.memory_space<any>>
    %c48_i32_20 = arith.constant 48 : i32
    %c0_i32_21 = arith.constant 0 : i32
    %25 = tpu.memref_slice %arg1[%c48_i32_20, %c0_i32_21] : memref<64x8192xf32, #tpu.memory_space<any>> -> memref<8x8192xf32, #tpu.memory_space<any>>
    %26 = tpu.memref_slice %arg2[%c6_i32] : memref<8x!tpu.dma_semaphore, #tpu.memory_space<semaphore_mem>> -> memref<1x!tpu.dma_semaphore, #tpu.memory_space<semaphore_mem>>
    %27 = tpu.memref_squeeze %26 : memref<1x!tpu.dma_semaphore, #tpu.memory_space<semaphore_mem>> -> memref<!tpu.dma_semaphore, #tpu.memory_space<semaphore_mem>>
    tpu.enqueue_dma source(%24 : memref<8x8192xf32, #tpu.memory_space<any>>) target(%25 : memref<8x8192xf32, #tpu.memory_space<any>>) target_semaphore(%27 : memref<!tpu.dma_semaphore, #tpu.memory_space<semaphore_mem>>)
    %c7_i32 = arith.constant 7 : i32
    %c56_i32 = arith.constant 56 : i32
    %c0_i32_22 = arith.constant 0 : i32
    %28 = tpu.memref_slice %arg0[%c56_i32, %c0_i32_22] : memref<64x8192xf32, #tpu.memory_space<any>> -> memref<8x8192xf32, #tpu.memory_space<any>>
    %c56_i32_23 = arith.constant 56 : i32
    %c0_i32_24 = arith.constant 0 : i32
    %29 = tpu.memref_slice %arg1[%c56_i32_23, %c0_i32_24] : memref<64x8192xf32, #tpu.memory_space<any>> -> memref<8x8192xf32, #tpu.memory_space<any>>
    %30 = tpu.memref_slice %arg2[%c7_i32] : memref<8x!tpu.dma_semaphore, #tpu.memory_space<semaphore_mem>> -> memref<1x!tpu.dma_semaphore, #tpu.memory_space<semaphore_mem>>
    %31 = tpu.memref_squeeze %30 : memref<1x!tpu.dma_semaphore, #tpu.memory_space<semaphore_mem>> -> memref<!tpu.dma_semaphore, #tpu.memory_space<semaphore_mem>>
    tpu.enqueue_dma source(%28 : memref<8x8192xf32, #tpu.memory_space<any>>) target(%29 : memref<8x8192xf32, #tpu.memory_space<any>>) target_semaphore(%31 : memref<!tpu.dma_semaphore, #tpu.memory_space<semaphore_mem>>)
    %c0_i32_25 = arith.constant 0 : i32
    %c0_i32_26 = arith.constant 0 : i32
    %c0_i32_27 = arith.constant 0 : i32
    %32 = tpu.memref_slice %arg0[%c0_i32_26, %c0_i32_27] : memref<64x8192xf32, #tpu.memory_space<any>> -> memref<8x8192xf32, #tpu.memory_space<any>>
    %c0_i32_28 = arith.constant 0 : i32
    %c0_i32_29 = arith.constant 0 : i32
    %33 = tpu.memref_slice %arg1[%c0_i32_28, %c0_i32_29] : memref<64x8192xf32, #tpu.memory_space<any>> -> memref<8x8192xf32, #tpu.memory_space<any>>
    %34 = tpu.memref_slice %arg2[%c0_i32_25] : memref<8x!tpu.dma_semaphore, #tpu.memory_space<semaphore_mem>> -> memref<1x!tpu.dma_semaphore, #tpu.memory_space<semaphore_mem>>
    %35 = tpu.memref_squeeze %34 : memref<1x!tpu.dma_semaphore, #tpu.memory_space<semaphore_mem>> -> memref<!tpu.dma_semaphore, #tpu.memory_space<semaphore_mem>>
    tpu.wait_dma2 semaphore(%35 : memref<!tpu.dma_semaphore, #tpu.memory_space<semaphore_mem>>) src(%32 : memref<8x8192xf32, #tpu.memory_space<any>>) dst(%33 : memref<8x8192xf32, #tpu.memory_space<any>>)
    %c1_i32_30 = arith.constant 1 : i32
    %c8_i32_31 = arith.constant 8 : i32
    %c0_i32_32 = arith.constant 0 : i32
    %36 = tpu.memref_slice %arg0[%c8_i32_31, %c0_i32_32] : memref<64x8192xf32, #tpu.memory_space<any>> -> memref<8x8192xf32, #tpu.memory_space<any>>
    %c8_i32_33 = arith.constant 8 : i32
    %c0_i32_34 = arith.constant 0 : i32
    %37 = tpu.memref_slice %arg1[%c8_i32_33, %c0_i32_34] : memref<64x8192xf32, #tpu.memory_space<any>> -> memref<8x8192xf32, #tpu.memory_space<any>>
    %38 = tpu.memref_slice %arg2[%c1_i32_30] : memref<8x!tpu.dma_semaphore, #tpu.memory_space<semaphore_mem>> -> memref<1x!tpu.dma_semaphore, #tpu.memory_space<semaphore_mem>>
    %39 = tpu.memref_squeeze %38 : memref<1x!tpu.dma_semaphore, #tpu.memory_space<semaphore_mem>> -> memref<!tpu.dma_semaphore, #tpu.memory_space<semaphore_mem>>
    tpu.wait_dma2 semaphore(%39 : memref<!tpu.dma_semaphore, #tpu.memory_space<semaphore_mem>>) src(%36 : memref<8x8192xf32, #tpu.memory_space<any>>) dst(%37 : memref<8x8192xf32, #tpu.memory_space<any>>)
    %c2_i32_35 = arith.constant 2 : i32
    %c16_i32_36 = arith.constant 16 : i32
    %c0_i32_37 = arith.constant 0 : i32
    %40 = tpu.memref_slice %arg0[%c16_i32_36, %c0_i32_37] : memref<64x8192xf32, #tpu.memory_space<any>> -> memref<8x8192xf32, #tpu.memory_space<any>>
    %c16_i32_38 = arith.constant 16 : i32
    %c0_i32_39 = arith.constant 0 : i32
    %41 = tpu.memref_slice %arg1[%c16_i32_38, %c0_i32_39] : memref<64x8192xf32, #tpu.memory_space<any>> -> memref<8x8192xf32, #tpu.memory_space<any>>
    %42 = tpu.memref_slice %arg2[%c2_i32_35] : memref<8x!tpu.dma_semaphore, #tpu.memory_space<semaphore_mem>> -> memref<1x!tpu.dma_semaphore, #tpu.memory_space<semaphore_mem>>
    %43 = tpu.memref_squeeze %42 : memref<1x!tpu.dma_semaphore, #tpu.memory_space<semaphore_mem>> -> memref<!tpu.dma_semaphore, #tpu.memory_space<semaphore_mem>>
    tpu.wait_dma2 semaphore(%43 : memref<!tpu.dma_semaphore, #tpu.memory_space<semaphore_mem>>) src(%40 : memref<8x8192xf32, #tpu.memory_space<any>>) dst(%41 : memref<8x8192xf32, #tpu.memory_space<any>>)
    %c3_i32_40 = arith.constant 3 : i32
    %c24_i32_41 = arith.constant 24 : i32
    %c0_i32_42 = arith.constant 0 : i32
    %44 = tpu.memref_slice %arg0[%c24_i32_41, %c0_i32_42] : memref<64x8192xf32, #tpu.memory_space<any>> -> memref<8x8192xf32, #tpu.memory_space<any>>
    %c24_i32_43 = arith.constant 24 : i32
    %c0_i32_44 = arith.constant 0 : i32
    %45 = tpu.memref_slice %arg1[%c24_i32_43, %c0_i32_44] : memref<64x8192xf32, #tpu.memory_space<any>> -> memref<8x8192xf32, #tpu.memory_space<any>>
    %46 = tpu.memref_slice %arg2[%c3_i32_40] : memref<8x!tpu.dma_semaphore, #tpu.memory_space<semaphore_mem>> -> memref<1x!tpu.dma_semaphore, #tpu.memory_space<semaphore_mem>>
    %47 = tpu.memref_squeeze %46 : memref<1x!tpu.dma_semaphore, #tpu.memory_space<semaphore_mem>> -> memref<!tpu.dma_semaphore, #tpu.memory_space<semaphore_mem>>
    tpu.wait_dma2 semaphore(%47 : memref<!tpu.dma_semaphore, #tpu.memory_space<semaphore_mem>>) src(%44 : memref<8x8192xf32, #tpu.memory_space<any>>) dst(%45 : memref<8x8192xf32, #tpu.memory_space<any>>)
    %c4_i32_45 = arith.constant 4 : i32
    %c32_i32_46 = arith.constant 32 : i32
    %c0_i32_47 = arith.constant 0 : i32
    %48 = tpu.memref_slice %arg0[%c32_i32_46, %c0_i32_47] : memref<64x8192xf32, #tpu.memory_space<any>> -> memref<8x8192xf32, #tpu.memory_space<any>>
    %c32_i32_48 = arith.constant 32 : i32
    %c0_i32_49 = arith.constant 0 : i32
    %49 = tpu.memref_slice %arg1[%c32_i32_48, %c0_i32_49] : memref<64x8192xf32, #tpu.memory_space<any>> -> memref<8x8192xf32, #tpu.memory_space<any>>
    %50 = tpu.memref_slice %arg2[%c4_i32_45] : memref<8x!tpu.dma_semaphore, #tpu.memory_space<semaphore_mem>> -> memref<1x!tpu.dma_semaphore, #tpu.memory_space<semaphore_mem>>
    %51 = tpu.memref_squeeze %50 : memref<1x!tpu.dma_semaphore, #tpu.memory_space<semaphore_mem>> -> memref<!tpu.dma_semaphore, #tpu.memory_space<semaphore_mem>>
    tpu.wait_dma2 semaphore(%51 : memref<!tpu.dma_semaphore, #tpu.memory_space<semaphore_mem>>) src(%48 : memref<8x8192xf32, #tpu.memory_space<any>>) dst(%49 : memref<8x8192xf32, #tpu.memory_space<any>>)
    %c5_i32_50 = arith.constant 5 : i32
    %c40_i32_51 = arith.constant 40 : i32
    %c0_i32_52 = arith.constant 0 : i32
    %52 = tpu.memref_slice %arg0[%c40_i32_51, %c0_i32_52] : memref<64x8192xf32, #tpu.memory_space<any>> -> memref<8x8192xf32, #tpu.memory_space<any>>
    %c40_i32_53 = arith.constant 40 : i32
    %c0_i32_54 = arith.constant 0 : i32
    %53 = tpu.memref_slice %arg1[%c40_i32_53, %c0_i32_54] : memref<64x8192xf32, #tpu.memory_space<any>> -> memref<8x8192xf32, #tpu.memory_space<any>>
    %54 = tpu.memref_slice %arg2[%c5_i32_50] : memref<8x!tpu.dma_semaphore, #tpu.memory_space<semaphore_mem>> -> memref<1x!tpu.dma_semaphore, #tpu.memory_space<semaphore_mem>>
    %55 = tpu.memref_squeeze %54 : memref<1x!tpu.dma_semaphore, #tpu.memory_space<semaphore_mem>> -> memref<!tpu.dma_semaphore, #tpu.memory_space<semaphore_mem>>
    tpu.wait_dma2 semaphore(%55 : memref<!tpu.dma_semaphore, #tpu.memory_space<semaphore_mem>>) src(%52 : memref<8x8192xf32, #tpu.memory_space<any>>) dst(%53 : memref<8x8192xf32, #tpu.memory_space<any>>)
    %c6_i32_55 = arith.constant 6 : i32
    %c48_i32_56 = arith.constant 48 : i32
    %c0_i32_57 = arith.constant 0 : i32
    %56 = tpu.memref_slice %arg0[%c48_i32_56, %c0_i32_57] : memref<64x8192xf32, #tpu.memory_space<any>> -> memref<8x8192xf32, #tpu.memory_space<any>>
    %c48_i32_58 = arith.constant 48 : i32
    %c0_i32_59 = arith.constant 0 : i32
    %57 = tpu.memref_slice %arg1[%c48_i32_58, %c0_i32_59] : memref<64x8192xf32, #tpu.memory_space<any>> -> memref<8x8192xf32, #tpu.memory_space<any>>
    %58 = tpu.memref_slice %arg2[%c6_i32_55] : memref<8x!tpu.dma_semaphore, #tpu.memory_space<semaphore_mem>> -> memref<1x!tpu.dma_semaphore, #tpu.memory_space<semaphore_mem>>
    %59 = tpu.memref_squeeze %58 : memref<1x!tpu.dma_semaphore, #tpu.memory_space<semaphore_mem>> -> memref<!tpu.dma_semaphore, #tpu.memory_space<semaphore_mem>>
    tpu.wait_dma2 semaphore(%59 : memref<!tpu.dma_semaphore, #tpu.memory_space<semaphore_mem>>) src(%56 : memref<8x8192xf32, #tpu.memory_space<any>>) dst(%57 : memref<8x8192xf32, #tpu.memory_space<any>>)
    %c7_i32_60 = arith.constant 7 : i32
    %c56_i32_61 = arith.constant 56 : i32
    %c0_i32_62 = arith.constant 0 : i32
    %60 = tpu.memref_slice %arg0[%c56_i32_61, %c0_i32_62] : memref<64x8192xf32, #tpu.memory_space<any>> -> memref<8x8192xf32, #tpu.memory_space<any>>
    %c56_i32_63 = arith.constant 56 : i32
    %c0_i32_64 = arith.constant 0 : i32
    %61 = tpu.memref_slice %arg1[%c56_i32_63, %c0_i32_64] : memref<64x8192xf32, #tpu.memory_space<any>> -> memref<8x8192xf32, #tpu.memory_space<any>>
    %62 = tpu.memref_slice %arg2[%c7_i32_60] : memref<8x!tpu.dma_semaphore, #tpu.memory_space<semaphore_mem>> -> memref<1x!tpu.dma_semaphore, #tpu.memory_space<semaphore_mem>>
    %63 = tpu.memref_squeeze %62 : memref<1x!tpu.dma_semaphore, #tpu.memory_space<semaphore_mem>> -> memref<!tpu.dma_semaphore, #tpu.memory_space<semaphore_mem>>
    tpu.wait_dma2 semaphore(%63 : memref<!tpu.dma_semaphore, #tpu.memory_space<semaphore_mem>>) src(%60 : memref<8x8192xf32, #tpu.memory_space<any>>) dst(%61 : memref<8x8192xf32, #tpu.memory_space<any>>)
    return
  }
}

</mosaic_0001>

<bundles_post_ra>
// kernel: tpu_custom_call.1
= control target key start
LH: loop header
LB: loop body
LE: loop exit
PB: predicated region body
PF: predicated region fallthrough
CT: control target
= control target key end

     0   :  { %s245_s9 = smov [#allocation2]   ;;  %s246_s10 = smov [#allocation3]   ;;  %s328_s0 = inlined_call_operand.hbm [shape: f32[64,8192], index: 0, kind: input, shape index: {}]   ;;  %s329_s1 = inlined_call_operand.hbm [shape: f32[64,8192], index: 1, kind: output, shape index: {}]  }
   0x1   :  { %s19_s8 = scalar_lea.hbm %s328_s0, 8192  ;;  %s247_s11 = smov 0  }
   0x2   :  { %18 = dma.general %s328_s0, 8192, %s329_s1, %s245_s9, %s246_s10, [#allocation4], %s247_s11, 0  }
   0x3   :  { %s20_s18 = scalar_lea.hbm %s329_s1, 8192  ;;  %s35_s21 = scalar_lea.hbm %s328_s0, 16384 }
   0x4   :  { %s248_s22 = smov [#allocation2 + $0x1]   ;;  %s249_s23 = smov [#allocation5]  }
   0x5   :  { %34 = dma.general %s19_s8, 8192, %s20_s18, %s248_s22, %s249_s23, [#allocation6], %s247_s11, 0  }
   0x6   :  { %s36_s26 = scalar_lea.hbm %s329_s1, 16384  ;;  %s51_s29 = scalar_lea.hbm %s328_s0, 24576 }
   0x7   :  { %s250_s30 = smov [#allocation2 + $0x2]   ;;  %s251_s2 = smov [#allocation7]  }
   0x8   :  { %50 = dma.general %s35_s21, 8192, %s36_s26, %s250_s30, %s251_s2, [#allocation8], %s247_s11, 0  }
   0x9   :  { %s52_s5 = scalar_lea.hbm %s329_s1, 24576  ;;  %s67_s8 = scalar_lea.hbm %s328_s0, 32768 }
   0xa   :  { %s252_s9 = smov [#allocation2 + $0x3]   ;;  %s253_s10 = smov [#allocation9]  }
   0xb   :  { %66 = dma.general %s51_s29, 8192, %s52_s5, %s252_s9, %s253_s10, [#allocation10], %s247_s11, 0  }
   0xc   :  { %s68_s14 = scalar_lea.hbm %s329_s1, 32768  ;;  %s83_s17 = scalar_lea.hbm %s328_s0, 40960 }
   0xd   :  { %s254_s18 = smov [#allocation2 + $0x4]   ;;  %s255_s19 = smov [#allocation11]  }
   0xe   :  { %82 = dma.general %s67_s8, 8192, %s68_s14, %s254_s18, %s255_s19, [#allocation12], %s247_s11, 0  }
   0xf   :  { %s84_s22 = scalar_lea.hbm %s329_s1, 40960  ;;  %s99_s25 = scalar_lea.hbm %s328_s0, 49152 }
  0x10   :  { %s256_s26 = smov [#allocation2 + $0x5]   ;;  %s257_s27 = smov [#allocation13]  }
  0x11   :  { %98 = dma.general %s83_s17, 8192, %s84_s22, %s256_s26, %s257_s27, [#allocation14], %s247_s11, 0  }
  0x12   :  { %s100_s30 = scalar_lea.hbm %s329_s1, 49152  ;;  %s115_s4 = scalar_lea.hbm %s328_s0, 57344 }
  0x13   :  { %s258_s5 = smov [#allocation2 + $0x6]   ;;  %s259_s6 = smov [#allocation15]  }
  0x14   :  { %114 = dma.general %s99_s25, 8192, %s100_s30, %s258_s5, %s259_s6, [#allocation16], %s247_s11, 0  }
  0x15   :  { %s116_s9 = scalar_lea.hbm %s329_s1, 57344  ;;  %s260_s10 = smov [#allocation2 + $0x7]  }
  0x16   :  { %s261_s12 = smov [#allocation17]  }
  0x17   :  { %130 = dma.general %s115_s4, 8192, %s116_s9, %s260_s10, %s261_s12, [#allocation18], %s247_s11, 0  }
  0x18   :  { %229 = dma.done.wait [#allocation2], 8192 }
  0x19   :  { %230 = vsyncadd [#allocation2], 4294959104 }
  0x1a   :  { %231 = dma.done.wait [#allocation2 + $0x1], 8192 }
  0x1b   :  { %232 = vsyncadd [#allocation2 + $0x1], 4294959104 }
  0x1c   :  { %233 = dma.done.wait [#allocation2 + $0x2], 8192 }
  0x1d   :  { %234 = vsyncadd [#allocation2 + $0x2], 4294959104 }
  0x1e   :  { %235 = dma.done.wait [#allocation2 + $0x3], 8192 }
  0x1f   :  { %236 = vsyncadd [#allocation2 + $0x3], 4294959104 }
  0x20   :  { %237 = dma.done.wait [#allocation2 + $0x4], 8192 }
  0x21   :  { %238 = vsyncadd [#allocation2 + $0x4], 4294959104 }
  0x22   :  { %239 = dma.done.wait [#allocation2 + $0x5], 8192 }
  0x23   :  { %240 = vsyncadd [#allocation2 + $0x5], 4294959104 }
  0x24   :  { %241 = dma.done.wait [#allocation2 + $0x6], 8192 }
  0x25   :  { %242 = vsyncadd [#allocation2 + $0x6], 4294959104 }
  0x26   :  { %243 = dma.done.wait [#allocation2 + $0x7], 8192 }
  0x27   :  { %244 = vsyncadd [#allocation2 + $0x7], 4294959104 }
  0x28   :  { %149 = vsyncmov [#allocation2] }
  0x2b   :  { %s150_s0 = vpop.sfrf %149 }
  0x2c   :  { %p204_p0 = scmp.ne.s32.totalorder %s150_s0, 0 }
  0x2e   :  { %154 = shalt.err (%p204_p0)  }
  0x2f   :  { %156 = vsyncmov [#allocation2 + $0x1] }
  0x32   :  { %s157_s1 = vpop.sfrf %156 }
  0x33   :  { %p205_p1 = scmp.ne.s32.totalorder %s157_s1, 0 }
  0x35   :  { %161 = shalt.err (%p205_p1)  }
  0x36   :  { %163 = vsyncmov [#allocation2 + $0x2] }
  0x39   :  { %s164_s11 = vpop.sfrf %163 }
  0x3a   :  { %p206_p2 = scmp.ne.s32.totalorder %s164_s11, 0 }
  0x3c   :  { %168 = shalt.err (%p206_p2)  }
  0x3d   :  { %170 = vsyncmov [#allocation2 + $0x3] }
  0x40   :  { %s171_s13 = vpop.sfrf %170 }
  0x41   :  { %p207_p3 = scmp.ne.s32.totalorder %s171_s13, 0 }
  0x43   :  { %175 = shalt.err (%p207_p3)  }
  0x44   :  { %177 = vsyncmov [#allocation2 + $0x4] }
  0x47   :  { %s178_s14 = vpop.sfrf %177 }
  0x48   :  { %p208_p4 = scmp.ne.s32.totalorder %s178_s14, 0 }
  0x4a   :  { %182 = shalt.err (%p208_p4)  }
  0x4b   :  { %184 = vsyncmov [#allocation2 + $0x5] }
  0x4e   :  { %s185_s15 = vpop.sfrf %184 }
  0x4f   :  { %p209_p5 = scmp.ne.s32.totalorder %s185_s15, 0 }
  0x51   :  { %189 = shalt.err (%p209_p5)  }
  0x52   :  { %191 = vsyncmov [#allocation2 + $0x6] }
  0x55   :  { %s192_s16 = vpop.sfrf %191 }
  0x56   :  { %p210_p6 = scmp.ne.s32.totalorder %s192_s16, 0 }
  0x58   :  { %196 = shalt.err (%p210_p6)  }
  0x59   :  { %198 = vsyncmov [#allocation2 + $0x7] }
  0x5c   :  { %s199_s17 = vpop.sfrf %198 }
  0x5d   :  { %p211_p7 = scmp.ne.s32.totalorder %s199_s17, 0 }
  0x5f   :  { %203 = shalt.err (%p211_p7)  }

</bundles_post_ra>
